<compile_context>
chip_gen: v7x
topology: tpu7x:2x2x1
jax: 0.10.0
libtpu: 0.0.40
codegen_flags: <defaults>
</compile_context>

<pallas_src>
import math

import jax
import jax.numpy as jnp
from jax.experimental import pallas as pl
from jax.experimental.pallas import tpu as pltpu


_NEG_LARGE = -1e30  # fill for padded logit columns; exp(pad - max) underflows to 0


def _classifier_kernel(x_ref, w_ref, b_ref, o_ref, acc_ref):
    k = pl.program_id(1)

    @pl.when(k == 0)
    def _():
        acc_ref[...] = jnp.zeros_like(acc_ref)

    # Partial matmul over this K tile; MXU with f32 accumulation.
    acc_ref[...] += jnp.dot(x_ref[...], w_ref[...],
                            preferred_element_type=jnp.float32)

    @pl.when(k == pl.num_programs(1) - 1)
    def _():
        # Epilogue (runs once per batch tile): bias + stable log_softmax in f32.
        logits = acc_ref[...] + b_ref[...]
        m = jnp.max(logits, axis=1, keepdims=True)
        shifted = logits - m
        lse = jnp.log(jnp.sum(jnp.exp(shifted), axis=1, keepdims=True))
        o_ref[...] = (shifted - lse).astype(o_ref.dtype)


def _round_up(x, m):
    return ((x + m - 1) // m) * m


def vanilla_classifier_forward(x, weight_t, bias, *,
                               block_b=256, block_k=512,
                               compute_dtype=jnp.bfloat16):
    """x: [B, ...] (trailing dims flattened), weight_t: [D, C], bias: [C].

    Returns [B, C] log-probabilities (log_softmax over dim=1), f32.
    Tile sizes (block_b / block_k) are conservative defaults that fit the
    scoped-VMEM default on v5e/v6e/v7x; raise for larger chips if desired.
    """
    B = x.shape[0]
    x_flat = x.reshape(B, -1)
    D = x_flat.shape[1]
    C = weight_t.shape[1]

    # Tile sizes respecting the (8, 128) layout constraint.
    tb = min(block_b, _round_up(B, 8))
    tk = min(block_k, _round_up(D, 128))
    b_pad = _round_up(B, tb)
    d_pad = _round_up(D, tk)
    c_pad = _round_up(C, 128)

    # Pad operands: zeros for x / W (do not change the matmul), large-negative
    # bias for the padded logit columns so they vanish in the softmax.
    x_p = jnp.zeros((b_pad, d_pad), compute_dtype).at[:B, :D].set(
        x_flat.astype(compute_dtype))
    w_p = jnp.zeros((d_pad, c_pad), compute_dtype).at[:D, :C].set(
        weight_t.astype(compute_dtype))
    b_p = jnp.full((1, c_pad), _NEG_LARGE, jnp.float32).at[0, :C].set(
        bias.astype(jnp.float32))

    grid = (b_pad // tb, d_pad // tk)

    out = pl.pallas_call(
        _classifier_kernel,
        out_shape=jax.ShapeDtypeStruct((b_pad, c_pad), jnp.float32),
        grid_spec=pltpu.PrefetchScalarGridSpec(
            num_scalar_prefetch=0,
            grid=grid,
            in_specs=[
                pl.BlockSpec((tb, tk), lambda i, k: (i, k)),      # x tile
                pl.BlockSpec((tk, c_pad), lambda i, k: (k, 0)),   # weight slab
                pl.BlockSpec((1, c_pad), lambda i, k: (0, 0)),    # bias (resident)
            ],
            out_specs=pl.BlockSpec((tb, c_pad), lambda i, k: (i, 0)),
            scratch_shapes=[pltpu.VMEM((tb, c_pad), jnp.float32)],
        ),
        compiler_params=pltpu.CompilerParams(
            dimension_semantics=("parallel", "arbitrary")),
    )(x_p, w_p, b_p)

    return out[:B, :C]


def init_params(key, input_size, output_size):
    """Mimic tf VarianceScaling(scale=0.1, mode='fan_in', truncated_normal)."""
    kw, kb = jax.random.split(key)
    # truncated normal on [-2, 2] with correction factor for the truncation
    stddev = math.sqrt(0.1 / input_size) / 0.87962566103423978
    weight_t = stddev * jax.random.truncated_normal(
        kw, -2.0, 2.0, (input_size, output_size), dtype=jnp.float32)
    # nn.Linear default bias init: U(-1/sqrt(fan_in), 1/sqrt(fan_in))
    bound = 1.0 / math.sqrt(input_size)
    bias = jax.random.uniform(kb, (output_size,), jnp.float32, -bound, bound)
    return weight_t, bias


if __name__ == "__main__":
    key = jax.random.PRNGKey(0)
    k_x, k_p = jax.random.split(key)

    # Small NCHW-like input: B=2, C=4, H=W=16  ->  input_size = 4*16*16 = 1024
    x = jax.random.normal(k_x, (2, 4, 16, 16), dtype=jnp.float32)
    input_size = 4 * 16 * 16
    output_size = 10

    weight_t, bias = init_params(k_p, input_size, output_size)

    out = vanilla_classifier_forward(x, weight_t, bias)
    out = jax.block_until_ready(out)

    # Reference: flatten -> linear -> log_softmax (pure JAX, f32).
    x_flat = x.reshape(x.shape[0], -1)
    ref = jax.nn.log_softmax(x_flat @ weight_t + bias, axis=1)

    assert out.shape == (2, output_size)
    # log_softmax rows exponentiate-and-sum to 1
    row_sums = jnp.sum(jnp.exp(out), axis=1)
    assert bool(jnp.all(jnp.abs(row_sums - 1.0) < 1e-4))
    # close to the f32 reference (bf16 operands, f32 accumulation)
    assert bool(jnp.max(jnp.abs(out - ref)) < 2e-2)

    print("KERNEL_OK")
</pallas_src>

<mosaic_0001>
module attributes {stable_mosaic.version = 11 : i64} {
  func.func @_classifier_kernel(%arg0: i32, %arg1: i32, %arg2: memref<8x512xbf16, #tpu.memory_space<vmem>>, %arg3: memref<512x128xbf16, #tpu.memory_space<vmem>>, %arg4: memref<1x128xf32, #tpu.memory_space<vmem>>, %arg5: memref<8x128xf32, #tpu.memory_space<vmem>>, %arg6: memref<8x128xf32, #tpu.memory_space<vmem>>) attributes {dimension_semantics = [#tpu.dimension_semantics<parallel>, #tpu.dimension_semantics<arbitrary>], iteration_bounds = array<i64: 1, 2>, scalar_prefetch = 0 : i64, scratch_operands = 1 : i64, tpu.core_type = #tpu.core_type<tc>, window_params = [{transform_indices = @transform_0, window_bounds = array<i64: 8, 512>}, {transform_indices = @transform_1, window_bounds = array<i64: 512, 128>}, {pipeline_mode = #tpu.pipeline_mode<synchronous>, transform_indices = @transform_2, window_bounds = array<i64: 1, 128>}, {transform_indices = @transform_3, window_bounds = array<i64: 8, 128>}]} {
    %c0_i32 = arith.constant 0 : i32
    %0 = arith.cmpi eq, %arg1, %c0_i32 : i32
    %1 = arith.extui %0 : i1 to i32
    %c0_i32_0 = arith.constant 0 : i32
    %2 = arith.cmpi ne, %1, %c0_i32_0 : i32
    scf.if %2 {
      %cst_9 = arith.constant 0.000000e+00 : f32
      %12 = vector.broadcast %cst_9 : f32 to vector<8x128xf32>
      %c0_10 = arith.constant 0 : index
      %c0_11 = arith.constant 0 : index
      %13 = vector.load %arg6[%c0_10, %c0_11] : memref<8x128xf32, #tpu.memory_space<vmem>>, vector<8x128xf32>
      tpu.vector_store %arg6[%c0_10, %c0_11], %12 {strides = array<i32>} : memref<8x128xf32, #tpu.memory_space<vmem>>, vector<8x128xf32>,
    } else {
    }
    %c0 = arith.constant 0 : index
    %c0_1 = arith.constant 0 : index
    %3 = vector.load %arg6[%c0, %c0_1] : memref<8x128xf32, #tpu.memory_space<vmem>>, vector<8x128xf32>
    %c0_2 = arith.constant 0 : index
    %c0_3 = arith.constant 0 : index
    %4 = vector.load %arg2[%c0_2, %c0_3] : memref<8x512xbf16, #tpu.memory_space<vmem>>, vector<8x512xbf16>
    %c0_4 = arith.constant 0 : index
    %c0_5 = arith.constant 0 : index
    %5 = vector.load %arg3[%c0_4, %c0_5] : memref<512x128xbf16, #tpu.memory_space<vmem>>, vector<512x128xbf16>
    %cst = arith.constant dense<0.000000e+00> : vector<8x128xf32>
    %6 = tpu.matmul %4, %5, %cst {dimension_numbers = #tpu.dot_dimension_numbers<[1], [0], [0], [1], [0, 0, 1, 1], [], []>} : vector<8x512xbf16>, vector<512x128xbf16>, vector<8x128xf32> -> vector<8x128xf32>
    %7 = arith.addf %3, %6 : vector<8x128xf32>
    %c0_6 = arith.constant 0 : index
    %c0_7 = arith.constant 0 : index
    %8 = vector.load %arg6[%c0_6, %c0_7] : memref<8x128xf32, #tpu.memory_space<vmem>>, vector<8x128xf32>
    tpu.vector_store %arg6[%c0_6, %c0_7], %7 {strides = array<i32>} : memref<8x128xf32, #tpu.memory_space<vmem>>, vector<8x128xf32>,
    %c1_i32 = arith.constant 1 : i32
    %9 = arith.cmpi eq, %arg1, %c1_i32 : i32
    %10 = arith.extui %9 : i1 to i32
    %c0_i32_8 = arith.constant 0 : i32
    %11 = arith.cmpi ne, %10, %c0_i32_8 : i32
    scf.if %11 {
      %c0_9 = arith.constant 0 : index
      %c0_10 = arith.constant 0 : index
      %12 = vector.load %arg6[%c0_9, %c0_10] : memref<8x128xf32, #tpu.memory_space<vmem>>, vector<8x128xf32>
      %c0_11 = arith.constant 0 : index
      %c0_12 = arith.constant 0 : index
      %13 = vector.load %arg4[%c0_11, %c0_12] : memref<1x128xf32, #tpu.memory_space<vmem>>, vector<1x128xf32>
      %14 = vector.broadcast %13 : vector<1x128xf32> to vector<8x128xf32>
      %15 = arith.addf %12, %14 : vector<8x128xf32>
      %cst_13 = arith.constant dense<0xFF800000> : vector<8xf32>
      %16 = vector.multi_reduction <maximumf>, %15, %cst_13 [1] : vector<8x128xf32> to vector<8xf32>
      %17 = vector.shape_cast %16 : vector<8xf32> to vector<8x1xf32>
      %18 = vector.broadcast %17 : vector<8x1xf32> to vector<8x128xf32>
      %19 = arith.subf %15, %18 : vector<8x128xf32>
      %20 = math.exp %19 : vector<8x128xf32>
      %cst_14 = arith.constant dense<0.000000e+00> : vector<8xf32>
      %21 = vector.multi_reduction <add>, %20, %cst_14 [1] : vector<8x128xf32> to vector<8xf32>
      %22 = vector.shape_cast %21 : vector<8xf32> to vector<8x1xf32>
      %23 = math.log %22 : vector<8x1xf32>
      %24 = vector.broadcast %23 : vector<8x1xf32> to vector<8x128xf32>
      %25 = arith.subf %19, %24 : vector<8x128xf32>
      %c0_15 = arith.constant 0 : index
      %c0_16 = arith.constant 0 : index
      %26 = vector.load %arg5[%c0_15, %c0_16] : memref<8x128xf32, #tpu.memory_space<vmem>>, vector<8x128xf32>
      tpu.vector_store %arg5[%c0_15, %c0_16], %25 {strides = array<i32>} : memref<8x128xf32, #tpu.memory_space<vmem>>, vector<8x128xf32>,
    } else {
    }
    return
  }
  func.func @transform_0(%arg0: i32, %arg1: i32) -> (i32, i32) {
    %c0_i32 = arith.constant 0 : i32
    return %arg0, %arg1 : i32, i32
  }
  func.func @transform_1(%arg0: i32, %arg1: i32) -> (i32, i32) {
    %c0_i32 = arith.constant 0 : i32
    %c0_i32_0 = arith.constant 0 : i32
    return %arg1, %c0_i32 : i32, i32
  }
  func.func @transform_2(%arg0: i32, %arg1: i32) -> (i32, i32) {
    %c0_i32 = arith.constant 0 : i32
    %c0_i32_0 = arith.constant 0 : i32
    %c0_i32_1 = arith.constant 0 : i32
    return %c0_i32, %c0_i32_0 : i32, i32
  }
  func.func @transform_3(%arg0: i32, %arg1: i32) -> (i32, i32) {
    %c0_i32 = arith.constant 0 : i32
    %c0_i32_0 = arith.constant 0 : i32
    return %arg0, %c0_i32 : i32, i32
  }
}

</mosaic_0001>

<bundles_post_ra>
// kernel: tpu_custom_call.1
= control target key start
LH: loop header
LB: loop body
LE: loop exit
PB: predicated region body
PF: predicated region fallthrough
CT: control target
= control target key end

     0   :  { %8 = vsyncpa [#allocation4], 0  ;;  %s1344_s0 = inlined_call_operand.hbm [shape: bf16[8,1024], index: 0, kind: input, shape index: {}]   ;;  %s1345_s1 = inlined_call_operand.hbm [shape: bf16[1024,128], index: 1, kind: input, shape index: {}]   ;;  %s1346_s2 = inlined_call_operand.vmem [shape: f32[1,128], index: 2, kind: input, shape index: {}]   ;;  %s1347_s3 = inlined_call_operand.hbm [shape: f32[8,128], index: 3, kind: output, shape index: {}]  }
   0x1   :  { %10 = vsyncpa [#allocation4 + $0x1], 0 }
   0x2   :  { %11 = vsyncpa [#allocation7], 0 }
   0x3   :  { %13 = vsyncpa [#allocation7 + $0x1], 0 }
   0x4   :  { %14 = vsyncpa [#allocation5], 0  ;;  %s1102_s12 = smov 0   ;;  %s1104_s13 = smov 0  }
   0x5   :  { %s1106_s14 = smov 0   ;;  %s1108_s15 = smov 0  }
   0x6   :  { %s1110_s16 = smov 0   ;;  %s1112_s17 = smov 0  }
   0x7 LB: > { %s719_s18 = sadd.s32 4294967295, %s1074_s17   ;;  %s29_s19 = sadd.s32 1, %s1070_s16  ;;  %s1074_s17 = sphi %s1112_s17, %s20_s17   ;;  %s1070_s16 = sphi %s1110_s16, %s1361_s16   ;;  %s1066_s15 = sphi %s1108_s15, %s1360_s15   ;;  %s1062_s14 = sphi %s1106_s14, %s1359_s14   ;;  %s1058_s13 = sphi %s1104_s13, %s1358_s13   ;;  %s1054_s12 = sphi %s1102_s12, %s1357_s12  }
   0x8   : > { %p30_p0 = scmp.ge.s32.totalorder %s29_s19, 2  ;;  %s41_s20 = sadd.s32 1, %s1062_s14 }
   0x9   : > { %p48_p1 = scmp.ne.s32.totalorder %s1062_s14, %s1058_s13  ;;  %p49_p2 = scmp.eq.s32.totalorder %s1074_s17, 0 }
   0xa   : > { %s1363_s19 = smov (%p30_p0, %s29_s19), 0  ;;  %p54_p4 = scmp.ne.s32.totalorder %s1058_s13, %s1054_s12 }
   0xb   : > { %p1138_p3 = por %p49_p2, %p48_p1  ;;  %s37_s22 = ssub.s32 %s1070_s16, %s1363_s19 }
   0xc   : > { %p55_p5 = scmp.eq.s32.totalorder %s719_s18, 0  ;;  %p39_p6 = scmp.eq.s32.totalorder %s37_s22, 0 }
   0xd   : > { %p835_p8 = scmp.lt.s32.totalorder %s1074_s17, 2  ;;  %s1156_s25 = sand.u32 1, %s1062_s14  }
   0xe   : > { %p1147_p7 = por %p55_p5, %p54_p4  ;;  %s774_s26 = sshll.u32 %s1070_s16, 8 }
   0xf   : > { %s1153_s24 = scalar_select %p39_p6, %s1062_s14, %s41_s20  }
  0x10   : > { %s1350_s23 = scalar_select %p1147_p7, 1, 0 }
  0x11   : > { %s722_s27 = sshll.u32 %s1156_s25, 4  ;;  %s1163_s30 = scalar_lea.hbm %s1344_s0, %s774_s26 }
  0x12   : > { %s158_s4 = scalar_lea.vmem [#allocation3], %s722_s27  ;;  %p1167_p9 = pnand %p835_p8, %p1138_p3 }
  0x13   : > { %s168_s5 = sshll.u32 %s158_s4, 4  ;;  %s155_s7 = scalar_lea.sflag [#allocation4], %s1156_s25  ;;  %s1171_s5 = int_to_ptr.vmem [resolvable:$true] %s168_s5 }
  0x14   : > { %s930_s8 = scalar_lea.hbm %s1163_s30, 256  ;;  %p932_p13 = pneg %p1167_p9 }
  0x15   : > { %p931_p12 = scmp.ne.s32.totalorder %s1163_s30, %s930_s8  ;;  %s935_s11 = scalar_lea.hbm %s1344_s0, 512 }
  0x16   : > { %p936_p2 = scmp.lt.u32.totalorder %s1163_s30, %s1344_s0  ;;  %p937_p3 = scmp.lt.u32.totalorder %s935_s11, %s930_s8 }
  0x17   : > { %p933_p0 = pnand %p932_p13, %p931_p12  ;;  %p939_p5 = scmp.lt.u32.totalorder %s930_s8, %s1163_s30 }
  0x18   : > { %p938_p4 = por %p937_p3, %p936_p2 }
  0x19   : > { %p934_p1 = pneg %p933_p0 }
  0x1a   : > { %p940_p6 = por %p939_p5, %p938_p4 }
  0x1c   : > { %p941_p8 = pnand %p940_p6, %p934_p1 }
  0x1e   : > { %944 = shalt.err (!%p941_p8)
}
  0x1f   : > { %s945_s21 = scalar_lea.vmem %s1171_s5, 256  ;;  %s1076_s22 = smov [#allocation3]  }
  0x20   : > { %p946_p12 = scmp.ne.s32.totalorder %s1171_s5, %s945_s21  ;;  %s950_s26 = sshll.u32 %s1076_s22, 4  ;;  %s951_s26 = int_to_ptr.vmem [resolvable:$false] %s950_s26 }
  0x21   : > { %s952_s27 = scalar_lea.vmem %s951_s26, 512  ;;  %p953_p11 = scmp.lt.s32.totalorder %s1171_s5, %s951_s26 }
  0x22   : > { %p948_p0 = pnand %p946_p12, %p932_p13  ;;  %p954_p2 = scmp.lt.s32.totalorder %s952_s27, %s945_s21 }
  0x24   : > { %p949_p10 = pneg %p948_p0  ;;  %p955_p3 = por %p954_p2, %p953_p11 }
  0x26   : > { %p956_p4 = pnand %p955_p3, %p949_p10 }
  0x28   : > { %959 = shalt.err (!%p956_p4)
}
  0x29   : > { %831 = dma.hbm_to_vmem [thread:$0]  (!%p1167_p9), %s1163_s30, 256, %s1171_s5, %s155_s7  }
  0x2a   : > { %p1352_p1 = scmp.lt.s32.totalorder %s1074_s17, 3  ;;  %p1353_p5 = scmp.ge.s32.totalorder %s1074_s17, 1 }
  0x2b   : > { %s725_s29 = sshll.u32 %s1156_s25, 8  ;;  %s775_s4 = sshll.u32 %s1070_s16, 12 }
  0x2c   : > { %p1205_p6 = pnand %p1353_p5, %p1352_p1  ;;  %s1214_s10 = scalar_lea.hbm %s1345_s1, %s775_s4 }
  0x2d   : > { %s179_s11 = scalar_lea.vmem [#allocation6], %s725_s29  ;;  %s176_s30 = scalar_lea.sflag [#allocation7], %s1156_s25 }
  0x2e   : > { %s186_s12 = sshll.u32 %s179_s11, 4  ;;  %s960_s5 = scalar_lea.hbm %s1214_s10, 4096  ;;  %s1216_s12 = int_to_ptr.vmem [resolvable:$true] %s186_s12 }
  0x2f   : > { %p961_p10 = scmp.ne.s32.totalorder %s1214_s10, %s960_s5  ;;  %s965_s21 = scalar_lea.hbm %s1345_s1, 8192 }
  0x30   : > { %p966_p12 = scmp.lt.u32.totalorder %s1214_s10, %s1345_s1  ;;  %p967_p0 = scmp.lt.u32.totalorder %s965_s21, %s960_s5 }
  0x31   : > { %p963_p11 = pnand %p961_p10, %p932_p13  ;;  %p969_p3 = scmp.lt.u32.totalorder %s960_s5, %s1214_s10 }
  0x32   : > { %p968_p2 = por %p967_p0, %p966_p12 }
  0x33   : > { %p964_p8 = pneg %p963_p11 }
  0x34   : > { %p970_p4 = por %p969_p3, %p968_p2 }
  0x36   : > { %p971_p1 = pnand %p970_p4, %p964_p8 }
  0x38   : > { %974 = shalt.err (!%p971_p1)
}
  0x39   : > { %s975_s27 = scalar_lea.vmem %s1216_s12, 4096  ;;  %s1077_s29 = smov [#allocation6]  }
  0x3a   : > { %p976_p5 = scmp.ne.s32.totalorder %s1216_s12, %s975_s27  ;;  %s980_s4 = sshll.u32 %s1077_s29, 4  ;;  %s981_s4 = int_to_ptr.vmem [resolvable:$false] %s980_s4 }
  0x3b   : > { %s982_s8 = scalar_lea.vmem %s981_s4, 8192  ;;  %p983_p7 = scmp.lt.s32.totalorder %s1216_s12, %s981_s4 }
  0x3c   : > { %p978_p10 = pnand %p976_p5, %p932_p13  ;;  %p984_p12 = scmp.lt.s32.totalorder %s982_s8, %s975_s27 }
  0x3e   : > { %p979_p11 = pneg %p978_p10  ;;  %p985_p0 = por %p984_p12, %p983_p7 }
  0x40   : > { %p986_p2 = pnand %p985_p0, %p979_p11 }
  0x42   : > { %989 = shalt.err (!%p986_p2)
}
  0x43   : > { %s1078_s9 = smov 64   ;;  %s1079_s11 = smov 4  }
  0x44   : > { %834 = dma.hbm_to_vmem [thread:$0]  (!%p1167_p9), %s1214_s10, 4096, %s1216_s12, %s176_s30, %s1078_s9, %s1078_s9, %s1079_s11  }
  0x45   : > { %198 = sbr.rel (%p1205_p6) target bundleno = 693 (0x2b5), region = 32  ;;  %s200_s5 = sand.u32 (!%p1205_p6), 1, %s1058_s13  }
  0x46   : > { %s729_s7 = sshll.u32 (!%p1205_p6), %s200_s5, 4  ;;  %s201_s20 = scalar_lea.sflag (!%p1205_p6), [#allocation4], %s200_s5 }
  0x47   : > { %s1247_s21 = scalar_lea.vmem (!%p1205_p6), [#allocation3], %s729_s7  ;;  %p1355_p7 = scmp.ne.s32.totalorder (!%p1205_p6), %s1350_s23, 0 }
  0x4c   : > { %1041 = dma.done.wait (%p1355_p7), %s201_s20, 256  }
  0x4d   : > { %1043 = vsyncadd (%p1355_p7), %s201_s20, 4294967040  ;;  %s730_s22 = sshll.u32 %s200_s5, 8  ;;  %s210_s6 = scalar_lea.sflag [#allocation7], %s200_s5 }
  0x4e   : > { %s1253_s25 = scalar_lea.vmem [#allocation6], %s730_s22 }
  0x4f   : > { %1045 = dma.done.wait (%p1355_p7), %s210_s6, 4096  }
  0x50   : > { %1047 = vsyncadd (%p1355_p7), %s210_s6, 4294963200  ;;  %p731_p9 = scmp.ne.s32.totalorder %s1066_s15, 0 }
  0x51   : > { %v1080_v0 = vmov (!%p731_p9), 0.0  }
  0x52   : > { %242 = sbr.rel (%p731_p9) target bundleno = 89 (0x59), region = 44  ;;  %243 = vst [vmem:[#allocation2] sm:$0xff] (!%p731_p9), %v1080_v0 }
  0x59 PF: > { %v890_v1 = vld [vmem:[%s1253_s25 + $0x40] sm:$0xff]   ;;  %v894_v5 = vld [vmem:[%s1253_s25 + $0x48] sm:$0xff]   ;;  %v898_v9 = vld [vmem:[%s1253_s25 + $0x50] sm:$0xff]   ;;  %p768_p13 = scmp.ne.s32.totalorder %s1066_s15, 1 }
  0x5a   : > { %v891_v2 = vld [vmem:[%s1253_s25 + $0xc0] sm:$0xff]   ;;  %776 = vmatprep.subr.bf16.mxu0 %v890_v1  ;;  %v895_v6 = vld [vmem:[%s1253_s25 + $0xc8] sm:$0xff]   ;;  %v899_v10 = vld [vmem:[%s1253_s25 + $0xd0] sm:$0xff]  }
  0x5b   : > { %v892_v3 = vld [vmem:[%s1253_s25] sm:$0xff]   ;;  %798 = vmatprep.subr.bf16.mxu1 %v891_v2  ;;  %v896_v7 = vld [vmem:[%s1253_s25 + $0x8] sm:$0xff]   ;;  %v900_v11 = vld [vmem:[%s1253_s25 + $0x10] sm:$0xff]  }
  0x5c   : > { %v893_v4 = vld [vmem:[%s1253_s25 + $0x80] sm:$0xff]   ;;  %777 = vmatpush3.bf16.msra.mxu0 %v892_v3  ;;  %v897_v8 = vld [vmem:[%s1253_s25 + $0x88] sm:$0xff]   ;;  %v901_v12 = vld [vmem:[%s1253_s25 + $0x90] sm:$0xff]  }
  0x5d   : > { %799 = vmatpush3.bf16.msra.mxu1 %v893_v4  ;;  %778 = vmatprep.subr.bf16.mxu0 %v894_v5  ;;  %v902_v13 = vld [vmem:[%s1253_s25 + $0x58] sm:$0xff]   ;;  %v906_v17 = vld [vmem:[%s1253_s25 + $0x60] sm:$0xff]   ;;  %v910_v21 = vld [vmem:[%s1253_s25 + $0x68] sm:$0xff]  }
  0x5e   : > { %800 = vmatprep.subr.bf16.mxu1 %v895_v6  ;;  %v903_v14 = vld [vmem:[%s1253_s25 + $0xd8] sm:$0xff]   ;;  %v907_v18 = vld [vmem:[%s1253_s25 + $0xe0] sm:$0xff]   ;;  %v911_v22 = vld [vmem:[%s1253_s25 + $0xe8] sm:$0xff]  }
  0x5f   : > { %v904_v15 = vld [vmem:[%s1253_s25 + $0x18] sm:$0xff]   ;;  %v908_v19 = vld [vmem:[%s1253_s25 + $0x20] sm:$0xff]   ;;  %v912_v23 = vld [vmem:[%s1253_s25 + $0x28] sm:$0xff]  }
  0x60   : > { %779 = vmatpush3.bf16.msra.mxu0 %v896_v7  ;;  %v905_v16 = vld [vmem:[%s1253_s25 + $0x98] sm:$0xff]   ;;  %v909_v20 = vld [vmem:[%s1253_s25 + $0xa0] sm:$0xff]   ;;  %v913_v24 = vld [vmem:[%s1253_s25 + $0xa8] sm:$0xff]  }
  0x61   : > { %801 = vmatpush3.bf16.msra.mxu1 %v897_v8  ;;  %780 = vmatprep.subr.bf16.mxu0 %v898_v9  ;;  %v914_v25 = vld [vmem:[%s1253_s25 + $0x70] sm:$0xff]   ;;  %v918_v29 = vld [vmem:[%s1253_s25 + $0x78] sm:$0xff]  }
  0x62   : > { %802 = vmatprep.subr.bf16.mxu1 %v899_v10  ;;  %v915_v26 = vld [vmem:[%s1253_s25 + $0xf0] sm:$0xff]   ;;  %v919_v30 = vld [vmem:[%s1253_s25 + $0xf8] sm:$0xff]  }
  0x63   : > { %v916_v27 = vld [vmem:[%s1253_s25 + $0x30] sm:$0xff]   ;;  %v920_v31 = vld [vmem:[%s1253_s25 + $0x38] sm:$0xff]  }
  0x64   : > { %781 = vmatpush3.bf16.msra.mxu0 %v900_v11  ;;  %v917_v28 = vld [vmem:[%s1253_s25 + $0xb0] sm:$0xff]   ;;  %v921_v32 = vld [vmem:[%s1253_s25 + $0xb8] sm:$0xff]  }
  0x65   : > { %803 = vmatpush3.bf16.msra.mxu1 %v901_v12  ;;  %782 = vmatprep.subr.bf16.mxu0 %v902_v13  ;;  %v245_v33 = vld [vmem:[%s1247_s21] sm:$0xff]  ;;  %v246_v34 = vld [vmem:[%s1247_s21 + $0x8] sm:$0xff] }
  0x66   : > { %804 = vmatprep.subr.bf16.mxu1 %v903_v14  ;;  %v732_v35 = vcombine.low %v245_v33, %v245_v33  ;;  %v733_v36 = vcombine.high %v245_v33, %v245_v33  ;;  %v734_v37 = vcombine.low %v246_v34, %v246_v34  ;;  %v735_v38 = vcombine.high %v246_v34, %v246_v34  ;;  %v244_v47 = vld [vmem:[#allocation2] sm:$0xff] }
  0x67   : > { %v769_v53 = vld [vmem:[%s1346_s2] ss:$0 sm:$0xff] (!%p768_p13) }
  0x68   : > { %783 = vmatpush3.bf16.msra.mxu0 %v904_v15  ;;  %549 = vmatprep.mubr.bf16.mxu0 %v733_v36 }
  0x69   : > { %805 = vmatpush3.bf16.msra.mxu1 %v905_v16  ;;  %784 = vmatprep.subr.bf16.mxu0 %v906_v17 }
  0x6a   : > { %806 = vmatprep.subr.bf16.mxu1 %v907_v18  ;;  %589 = vmatprep.mubr.bf16.mxu1 %v735_v38 }
  0x6c   : > { %785 = vmatpush3.bf16.msra.mxu0 %v908_v19 }
  0x6d   : > { %807 = vmatpush3.bf16.msra.mxu1 %v909_v20  ;;  %786 = vmatprep.subr.bf16.mxu0 %v910_v21 }
  0x6e   : > { %808 = vmatprep.subr.bf16.mxu1 %v911_v22 }
  0x70   : > { %787 = vmatpush3.bf16.msra.mxu0 %v912_v23 }
  0x71   : > { %809 = vmatpush3.bf16.msra.mxu1 %v913_v24  ;;  %788 = vmatprep.subr.bf16.mxu0 %v914_v25 }
  0x72   : > { %810 = vmatprep.subr.bf16.mxu1 %v915_v26 }
  0x74   : > { %789 = vmatpush3.bf16.msra.mxu0 %v916_v27 }
  0x75   : > { %811 = vmatpush3.bf16.msra.mxu1 %v917_v28  ;;  %790 = vmatprep.subr.bf16.mxu0 %v918_v29 }
  0x76   : > { %812 = vmatprep.subr.bf16.mxu1 %v919_v30 }
  0x78   : > { %791 = vmatpush3.bf16.msra.mxu0 %v920_v31 }
  0x79   : > { %813 = vmatpush3.bf16.msra.mxu1 %v921_v32 }
  0x7b   : > { %550 = vmatmul.mubr.bf16.vlgmr.msra.gmra.mrb[0].mxu0 %v732_v35 }
  0x7c   : > { %590 = vmatmul.mubr.bf16.vlgmr.msra.gmra.mrb[0].mxu1 %v734_v37 }
 0x14e   : > { %v792_v39 = vpop.f32.mrb[0].mxu0 }
 0x14f   : > { %v814_v40 = vpop.f32.mrb[0].mxu1  ;;  %v793_v41 = vpop.f32.mrb[1].mxu0 }
 0x150   : > { %v815_v42 = vpop.f32.mrb[1].mxu1  ;;  %v794_v43 = vadd.f32 %v793_v41, %v792_v39  ;;  %v795_v45 = vpop.f32.mrb[2].mxu0 }
 0x151   : > { %v816_v44 = vadd.f32 %v815_v42, %v814_v40  ;;  %v817_v46 = vpop.f32.mrb[2].mxu1  ;;  %v796_v48 = vpop.f32.mrb[3].mxu0  ;;  %602 = sbr.rel (%p768_p13) target bundleno = 668 (0x29c), region = 48 }
 0x152   : > { %v818_v49 = vpop.f32.mrb[3].mxu1 }
 0x153   : > { %v592_v50 = vadd.f32 %v816_v44, %v794_v43 }
 0x155   : > { %v597_v51 = vadd.f32 %v592_v50, %v244_v47 }
 0x157   : > { %598 = vst [vmem:[#allocation2] sm:$0xff] %v597_v51 }
 0x15e   : > { %v603_v52 = vld [vmem:[#allocation2] sm:$0xff] }
 0x15f   : > { %v611_v54 = vadd.f32 %v769_v53, %v603_v52 }
 0x161   : > { %612 = vmax.xlane.f32.xlu0 %v611_v54 }
 0x1ee   : > { %v613_v55 = vpop.xlane.xlu0 %612 }
 0x1ef   : > { %v614_v56 = vsub.f32 %v611_v54, %v613_v55 }
 0x1f1   : > { %v615_v57 = vmul.f32 1.442695, %v614_v56 }
 0x1f3   : > { %926 = vpow2.f32 %v615_v57 }
 0x1fd   : > { %v927_v58 = vpop.eup %926 }
 0x1fe   : > { %617 = vadd.xlane.f32.xlu0 %v927_v58 }
 0x28b   : > { %v618_v59 = vpop.xlane.xlu0 %617 }
 0x28c   : > { %928 = vlog2.f32 %v618_v59 }
 0x296   : > { %v929_v60 = vpop.eup %928 }
 0x297   : > { %v620_v61 = vmul.f32 0.6931472, %v929_v60 }
 0x299   : > { %v621_v62 = vsub.f32 %v614_v56, %v620_v61 }
 0x29b   : > { %622 = vst [vmem:[#allocation8] sm:$0xff] %v621_v62 }
 0x29c PF: > { %p1300_p6 = scmp.eq.s32.totalorder %s719_s18, 1  ;;  %s1081_s10 = smov [#allocation8]  }
 0x29d   : > { %s632_s12 = sshll.u32 %s1081_s10, 4  ;;  %s633_s12 = int_to_ptr.vmem [resolvable:$true] %s632_s12 }
 0x29e   : > { %s990_s30 = scalar_lea.vmem %s633_s12, 128  ;;  %p997_p1 = scmp.lt.s32.totalorder %s633_s12, %s633_s12 }
 0x29f   : > { %p991_p8 = scmp.ne.s32.totalorder %s633_s12, %s990_s30  ;;  %p998_p5 = scmp.lt.s32.totalorder %s990_s30, %s990_s30 }
 0x2a1   : > { %p992_p3 = pnand %p991_p8, %p1300_p6  ;;  %p999_p10 = por %p998_p5, %p997_p1 }
 0x2a3   : > { %p993_p4 = pneg %p992_p3 }
 0x2a5   : > { %p1000_p11 = pnand %p999_p10, %p993_p4 }
 0x2a7   : > { %1003 = shalt.err (!%p1000_p11)
}
 0x2a8   : > { %s1004_s18 = scalar_lea.hbm %s1347_s3, 128 }
 0x2a9   : > { %p1005_p12 = scmp.ne.s32.totalorder %s1347_s3, %s1004_s18  ;;  %p1010_p7 = scmp.lt.u32.totalorder %s1004_s18, %s1347_s3 }
 0x2ab   : > { %p1006_p0 = pnand %p1005_p12, %p1300_p6 }
 0x2ad   : > { %p1007_p2 = pneg %p1006_p0 }
 0x2af   : > { %p1012_p9 = pnand %p1010_p7, %p1007_p2 }
 0x2b1   : > { %1015 = shalt.err (!%p1012_p9)
}
 0x2b2   : > { %825 = dma.vmem_to_hbm [thread:$0]  (%p1300_p6), %s633_s12, 128, %s1347_s3, [#allocation5]  }
 0x2b3   : > { %1049 = dma.done.wait (%p1300_p6), [#allocation5], 128  }
 0x2b4   : > { %1051 = vsyncadd (%p1300_p6), [#allocation5], 4294967168 }
 0x2b5 PF: > { %s20_s17 = sadd.s32 1, %s1074_s17   ;;  %s1357_s12 = smov %s1058_s13 }
 0x2b6   : > { %p17_p13 = scmp.ge.s32.totalorder %s20_s17, 4   ;;  %s1358_s13 = smov %s1062_s14 }
 0x2b7   : > { %s1359_s14 = smov %s1153_s24  ;;  %s1360_s15 = smov %s1070_s16 }
 0x2b8   : > { %s1361_s16 = smov %s1363_s19  ;;  %19 = sbr.rel (!%p17_p13) target bundleno = 7 (0x7), region = 91 }
 0x2bf   :  { %645 = vsyncpa [#allocation4], 1 }
 0x2c0   :  { %647 = vsyncpa [#allocation4 + $0x1], 1 }
 0x2c1   :  { %648 = vsyncpa [#allocation7], 1 }
 0x2c2   :  { %650 = vsyncpa [#allocation7 + $0x1], 1 }
 0x2c3   :  { %651 = vsyncpa [#allocation5], 1 }
 0x2c4   :  { %653 = vsyncpa [#allocation5 + $0x1], 1 }

</bundles_post_ra>
